<compile_context>
chip_gen: v7x
topology: tpu7x:2x2x1
jax: 0.10.0
libtpu: 0.0.40
codegen_flags: <defaults>
</compile_context>

<pallas_src>
import jax
import jax.numpy as jnp
from jax.experimental import pallas as pl
from jax.experimental.pallas import tpu as pltpu

L_IN = 150                       # input length
C_IN = 3                         # input channels
LPAD = 152                       # per-sample lane stride at the input (>= L_IN + 2, divisible by 4)
L1 = L_IN - 2                    # 148  after conv1 (k=3, valid)
P1 = L1 // 2                     # 74   after pool1
L2 = P1 - 2                      # 72   after conv2
P2 = L2 // 2                     # 36   after pool2  -> 24*36 = 864 flatten features
S1 = LPAD // 2                   # 76   per-sample lane stride after pool1
S2 = LPAD // 4                   # 38   per-sample lane stride after pool2

assert LPAD >= L_IN + 2 and LPAD % 4 == 0
assert 24 * P2 == 864            # matches nn.Linear(864, 32)


# ------------------------------------ kernel ------------------------------------

def _model_kernel(x_ref,
                  w1_ref, b1_ref,
                  w2_ref, b2_ref,
                  w3_ref, b3_ref,
                  w4_ref, b4_ref,
                  se1_ref, so1_ref, se2_ref, so2_ref,
                  wft_ref, osel_ref, hb_ref,
                  o_ref):
    f32 = jnp.float32
    X = x_ref[...]                      # (3, B*LPAD)  lane-packed batch
    W1 = se1_ref.shape[0]               # B*LPAD - 2
    W2 = se2_ref.shape[0]               # B*S1 - 3

    # ---- conv1 (k=3) as 3 shifted batched matmuls; BN1 pre-folded into weights/bias ----
    y = jnp.dot(w1_ref[0], X[:, 0:W1], preferred_element_type=f32)
    y = y + jnp.dot(w1_ref[1], X[:, 1:1 + W1], preferred_element_type=f32)
    y = y + jnp.dot(w1_ref[2], X[:, 2:2 + W1], preferred_element_type=f32)
    y = jnp.maximum(y + b1_ref[...], 0.0)                                  # (8, W1)

    # ---- maxpool1: even/odd lane selections, one MXU push per selector for the whole batch ----
    p1 = jnp.maximum(jnp.dot(y, se1_ref[...], preferred_element_type=f32),
                     jnp.dot(y, so1_ref[...], preferred_element_type=f32))  # (8, W1//2)

    # ---- conv2 (k=3); BN2 folded ----
    z = jnp.dot(w2_ref[0], p1[:, 0:W2], preferred_element_type=f32)
    z = z + jnp.dot(w2_ref[1], p1[:, 1:1 + W2], preferred_element_type=f32)
    z = z + jnp.dot(w2_ref[2], p1[:, 2:2 + W2], preferred_element_type=f32)
    z = jnp.maximum(z + b2_ref[...], 0.0)                                  # (8, W2)

    # ---- maxpool2 ----
    p2 = jnp.maximum(jnp.dot(z, se2_ref[...], preferred_element_type=f32),
                     jnp.dot(z, so2_ref[...], preferred_element_type=f32))  # (8, W2//2)

    # ---- conv3 / conv4 (1x1); BN3/BN4 folded ----
    u = jnp.maximum(jnp.dot(w3_ref[...], p2, preferred_element_type=f32) + b3_ref[...], 0.0)  # (16, .)
    v = jnp.maximum(jnp.dot(w4_ref[...], u, preferred_element_type=f32) + b4_ref[...], 0.0)   # (24, .)

    # dropout(0.25): identity in eval mode.

    # ---- head: dense2∘dense1 folded to a (24, P2) weight, tiled across the batch lanes.
    #      E[c,b] = sum_l Wf[c,l] * V[c, b*S2 + l]  via elementwise-mul + selection matmul. ----
    e = jnp.dot(v * wft_ref[...], osel_ref[...], preferred_element_type=f32)   # (24, B)
    o_ref[...] = jnp.sum(e, axis=0, keepdims=True) + hb_ref[...]               # (1, B) lane-dense


# ------------------------------ host-side param folding ------------------------------

def _even_odd_select(win, wout):
    i = jnp.arange(win)[:, None]
    j = jnp.arange(wout)[None, :]
    se = (i == 2 * j).astype(jnp.float32)        # picks lanes 0,2,4,...
    so = (i == 2 * j + 1).astype(jnp.float32)    # picks lanes 1,3,5,...
    return se, so


def fold_params(params, B):
    """Fold BN affines + fc1∘fc2 into the conv/head weights and build the batched
    selection / head matrices for a lane-packed batch of size B."""
    (w1, b1, s1, t1, w2, b2, s2, t2, w3, b3, s3, t3,
     w4, b4, s4, t4, wd1, bd1, wd2, bd2) = params

    # BN(relu(conv)) with scale>0:  s*relu(Wx+b)+t = relu((sW)x + sb) + t ;
    # the +t commutes with max-pool and is absorbed into the NEXT layer's bias.
    w1f = w1 * s1[:, None, None]
    b1f = b1 * s1
    b2c = b2 + jnp.einsum('ock,c->o', w2, t1)
    w2f = w2 * s2[:, None, None]
    b2f = b2c * s2
    b3c = b3 + w3 @ t2
    w3f = w3 * s3[:, None]
    b3f = b3c * s3
    b4c = b4 + w4 @ t3
    w4f = w4 * s4[:, None]
    b4f = b4c * s4

    # head: dense2(dense1(x)) == (wd2@wd1) x + (wd2@bd1 + bd2); t4 carried into the bias.
    wf = (wd2 @ wd1).reshape(24, P2)                       # channel-major, matches torch Flatten
    hb = (wd2 @ bd1 + bd2 + jnp.sum(wf * t4[:, None])).reshape(1, 1)

    # per-tap conv weights (K, Cout, Cin)
    w1k = jnp.transpose(w1f, (2, 0, 1))                    # (3, 8, 3)
    w2k = jnp.transpose(w2f, (2, 0, 1))                    # (3, 8, 8)

    # batched pooling selectors and head selector/tiled-weight
    Wtot = B * LPAD
    W1 = Wtot - 2
    W1p = W1 // 2                                          # = B*S1 - 1
    W2 = W1p - 2
    W2p = W2 // 2                                          # = B*S2 - 2
    se1, so1 = _even_odd_select(W1, W1p)
    se2, so2 = _even_odd_select(W2, W2p)

    wft = jnp.tile(jnp.pad(wf, ((0, 0), (0, S2 - P2))), (1, B))[:, :W2p]       # (24, W2p)
    j = jnp.arange(W2p)[:, None]
    b = jnp.arange(B)[None, :]
    osel = ((j >= b * S2) & (j < b * S2 + P2)).astype(jnp.float32)             # (W2p, B)

    return (w1k, b1f[:, None], w2k, b2f[:, None],
            w3f, b3f[:, None], w4f, b4f[:, None],
            se1, so1, se2, so2, wft, osel, hb)


def base_model_forward(x, params):
    """x: (B, L_IN, C_IN) float32 — exactly the tensor the torch model receives."""
    B = x.shape[0]
    kparams = fold_params(params, B)

    # permute(0,2,1) -> NCL, then pack the batch along lanes with per-sample stride LPAD.
    x_ncl = jnp.transpose(x, (0, 2, 1)).astype(jnp.float32)                    # (B, 3, 150)
    x_pad = jnp.pad(x_ncl, ((0, 0), (0, 0), (0, LPAD - L_IN)))                 # (B, 3, 152)
    x_packed = jnp.transpose(x_pad, (1, 0, 2)).reshape(C_IN, B * LPAD)         # (3, B*152)

    args = [x_packed] + list(kparams)
    vmem = pltpu.MemorySpace.VMEM
    out = pl.pallas_call(
        _model_kernel,
        out_shape=jax.ShapeDtypeStruct((1, B), jnp.float32),   # lane-dense output
        in_specs=[pl.BlockSpec(memory_space=vmem) for _ in args],
        out_specs=pl.BlockSpec(memory_space=vmem),
    )(*args)
    return out.reshape(B, 1)


# --------------------------- deterministic parameter setup ---------------------------

def make_params(key):
    ks = iter(jax.random.split(key, 32))
    f32 = jnp.float32

    def bn_affine(c):
        gamma = jax.random.uniform(next(ks), (c,), dtype=f32, minval=0.5, maxval=1.5)
        beta = 0.1 * jax.random.normal(next(ks), (c,), f32)
        rmean = 0.1 * jax.random.normal(next(ks), (c,), f32)
        rvar = jax.random.uniform(next(ks), (c,), dtype=f32, minval=0.5, maxval=1.5)
        scale = gamma / jnp.sqrt(rvar + 1e-5)     # > 0, required for the ReLU/BN fold
        shift = beta - rmean * scale
        return scale, shift

    w1 = 0.2 * jax.random.normal(next(ks), (8, 3, 3), f32)     # (Cout, Cin, K) torch layout
    b1 = 0.1 * jax.random.normal(next(ks), (8,), f32)
    s1, t1 = bn_affine(8)
    w2 = 0.2 * jax.random.normal(next(ks), (8, 8, 3), f32)
    b2 = 0.1 * jax.random.normal(next(ks), (8,), f32)
    s2, t2 = bn_affine(8)
    w3 = 0.2 * jax.random.normal(next(ks), (16, 8), f32)       # conv k=1 -> (Cout, Cin)
    b3 = 0.1 * jax.random.normal(next(ks), (16,), f32)
    s3, t3 = bn_affine(16)
    w4 = 0.2 * jax.random.normal(next(ks), (24, 16), f32)
    b4 = 0.1 * jax.random.normal(next(ks), (24,), f32)
    s4, t4 = bn_affine(24)
    wd1 = 0.05 * jax.random.normal(next(ks), (32, 864), f32)   # torch Linear(864, 32) weight
    bd1 = 0.1 * jax.random.normal(next(ks), (32,), f32)
    wd2 = 0.1 * jax.random.normal(next(ks), (1, 32), f32)
    bd2 = 0.1 * jax.random.normal(next(ks), (1,), f32)

    return (w1, b1, s1, t1, w2, b2, s2, t2, w3, b3, s3, t3,
            w4, b4, s4, t4, wd1, bd1, wd2, bd2)


# ---------------------- pure-JAX reference (for verification) ----------------------

def reference_forward(x, params):
    (w1, b1, s1, t1, w2, b2, s2, t2, w3, b3, s3, t3,
     w4, b4, s4, t4, wd1, bd1, wd2, bd2) = params

    h = jnp.transpose(x, (0, 2, 1))                     # (B, 3, 150)

    def conv1d(h, w, bias):                             # w: (O, I, K)
        y = jax.lax.conv_general_dilated(h, w, (1,), 'VALID',
                                         dimension_numbers=('NCH', 'OIH', 'NCH'))
        return y + bias[None, :, None]

    def pool(h):
        B_, C_, L_ = h.shape
        return h.reshape(B_, C_, L_ // 2, 2).max(axis=-1)

    h = jnp.maximum(conv1d(h, w1, b1), 0.0)
    h = h * s1[None, :, None] + t1[None, :, None]
    h = pool(h)
    h = jnp.maximum(conv1d(h, w2, b2), 0.0)
    h = h * s2[None, :, None] + t2[None, :, None]
    h = pool(h)
    h = jnp.maximum(jnp.einsum('oc,bcl->bol', w3, h) + b3[None, :, None], 0.0)
    h = h * s3[None, :, None] + t3[None, :, None]
    h = jnp.maximum(jnp.einsum('oc,bcl->bol', w4, h) + b4[None, :, None], 0.0)
    h = h * s4[None, :, None] + t4[None, :, None]
    flat = h.reshape(h.shape[0], -1)                    # (B, 864) channel-major like torch Flatten
    d1 = flat @ wd1.T + bd1[None, :]
    d2 = d1 @ wd2.T + bd2[None, :]
    return d2


if __name__ == "__main__":
    key = jax.random.PRNGKey(0)
    kx, kp = jax.random.split(key)
    B = 2
    x = jax.random.normal(kx, (B, L_IN, C_IN), jnp.float32)    # batch=2, seq=150, channels=3
    params = make_params(kp)

    out = jax.block_until_ready(base_model_forward(x, params))
    ref = reference_forward(x, params)

    assert out.shape == (B, 1), out.shape
    assert bool(jnp.all(jnp.isfinite(out)))
    assert bool(jnp.allclose(out, ref, atol=1e-2, rtol=1e-2)), (out, ref)
    print("KERNEL_OK")
</pallas_src>

<mosaic_0001>
module attributes {stable_mosaic.version = 11 : i64} {
  func.func @_model_kernel(%arg0: memref<3x304xf32, #tpu.memory_space<vmem>>, %arg1: memref<3x8x3xf32, #tpu.memory_space<vmem>>, %arg2: memref<8x1xf32, #tpu.memory_space<vmem>>, %arg3: memref<3x8x8xf32, #tpu.memory_space<vmem>>, %arg4: memref<8x1xf32, #tpu.memory_space<vmem>>, %arg5: memref<16x8xf32, #tpu.memory_space<vmem>>, %arg6: memref<16x1xf32, #tpu.memory_space<vmem>>, %arg7: memref<24x16xf32, #tpu.memory_space<vmem>>, %arg8: memref<24x1xf32, #tpu.memory_space<vmem>>, %arg9: memref<302x151xf32, #tpu.memory_space<vmem>>, %arg10: memref<302x151xf32, #tpu.memory_space<vmem>>, %arg11: memref<149x74xf32, #tpu.memory_space<vmem>>, %arg12: memref<149x74xf32, #tpu.memory_space<vmem>>, %arg13: memref<24x74xf32, #tpu.memory_space<vmem>>, %arg14: memref<74x2xf32, #tpu.memory_space<vmem>>, %arg15: memref<1x1xf32, #tpu.memory_space<vmem>>, %arg16: memref<1x2xf32, #tpu.memory_space<vmem>>) attributes {dimension_semantics = [], scalar_prefetch = 0 : i64, scratch_operands = 0 : i64, tpu.core_type = #tpu.core_type<tc>} {
    %c0 = arith.constant 0 : index
    %c0_0 = arith.constant 0 : index
    %0 = vector.load %arg0[%c0, %c0_0] : memref<3x304xf32, #tpu.memory_space<vmem>>, vector<3x304xf32>
    %c0_1 = arith.constant 0 : index
    %c0_2 = arith.constant 0 : index
    %c0_3 = arith.constant 0 : index
    %1 = vector.load %arg1[%c0_1, %c0_2, %c0_3] : memref<3x8x3xf32, #tpu.memory_space<vmem>>, vector<1x8x3xf32>
    %2 = vector.shape_cast %1 : vector<1x8x3xf32> to vector<8x3xf32>
    %3 = vector.extract_strided_slice %0 {offsets = [0, 0], sizes = [3, 302], strides = [1, 1]} : vector<3x304xf32> to vector<3x302xf32>
    %cst = arith.constant dense<0.000000e+00> : vector<8x302xf32>
    %4 = tpu.matmul %2, %3, %cst {dimension_numbers = #tpu.dot_dimension_numbers<[1], [0], [0], [1], [0, 0, 1, 1], [], []>} : vector<8x3xf32>, vector<3x302xf32>, vector<8x302xf32> -> vector<8x302xf32>
    %c1 = arith.constant 1 : index
    %c0_4 = arith.constant 0 : index
    %c0_5 = arith.constant 0 : index
    %5 = vector.load %arg1[%c1, %c0_4, %c0_5] : memref<3x8x3xf32, #tpu.memory_space<vmem>>, vector<1x8x3xf32>
    %6 = vector.shape_cast %5 : vector<1x8x3xf32> to vector<8x3xf32>
    %7 = vector.extract_strided_slice %0 {offsets = [0, 1], sizes = [3, 302], strides = [1, 1]} : vector<3x304xf32> to vector<3x302xf32>
    %cst_6 = arith.constant dense<0.000000e+00> : vector<8x302xf32>
    %8 = tpu.matmul %6, %7, %cst_6 {dimension_numbers = #tpu.dot_dimension_numbers<[1], [0], [0], [1], [0, 0, 1, 1], [], []>} : vector<8x3xf32>, vector<3x302xf32>, vector<8x302xf32> -> vector<8x302xf32>
    %9 = arith.addf %4, %8 : vector<8x302xf32>
    %c2 = arith.constant 2 : index
    %c0_7 = arith.constant 0 : index
    %c0_8 = arith.constant 0 : index
    %10 = vector.load %arg1[%c2, %c0_7, %c0_8] : memref<3x8x3xf32, #tpu.memory_space<vmem>>, vector<1x8x3xf32>
    %11 = vector.shape_cast %10 : vector<1x8x3xf32> to vector<8x3xf32>
    %12 = vector.extract_strided_slice %0 {offsets = [0, 2], sizes = [3, 302], strides = [1, 1]} : vector<3x304xf32> to vector<3x302xf32>
    %cst_9 = arith.constant dense<0.000000e+00> : vector<8x302xf32>
    %13 = tpu.matmul %11, %12, %cst_9 {dimension_numbers = #tpu.dot_dimension_numbers<[1], [0], [0], [1], [0, 0, 1, 1], [], []>} : vector<8x3xf32>, vector<3x302xf32>, vector<8x302xf32> -> vector<8x302xf32>
    %14 = arith.addf %9, %13 : vector<8x302xf32>
    %c0_10 = arith.constant 0 : index
    %c0_11 = arith.constant 0 : index
    %15 = vector.load %arg2[%c0_10, %c0_11] : memref<8x1xf32, #tpu.memory_space<vmem>>, vector<8x1xf32>
    %16 = vector.broadcast %15 : vector<8x1xf32> to vector<8x302xf32>
    %17 = arith.addf %14, %16 : vector<8x302xf32>
    %cst_12 = arith.constant 0.000000e+00 : f32
    %18 = vector.broadcast %cst_12 : f32 to vector<8x302xf32>
    %19 = arith.maximumf %17, %18 : vector<8x302xf32>
    %c0_13 = arith.constant 0 : index
    %c0_14 = arith.constant 0 : index
    %20 = vector.load %arg9[%c0_13, %c0_14] : memref<302x151xf32, #tpu.memory_space<vmem>>, vector<302x151xf32>
    %cst_15 = arith.constant dense<0.000000e+00> : vector<8x151xf32>
    %21 = tpu.matmul %19, %20, %cst_15 {dimension_numbers = #tpu.dot_dimension_numbers<[1], [0], [0], [1], [0, 0, 1, 1], [], []>} : vector<8x302xf32>, vector<302x151xf32>, vector<8x151xf32> -> vector<8x151xf32>
    %c0_16 = arith.constant 0 : index
    %c0_17 = arith.constant 0 : index
    %22 = vector.load %arg10[%c0_16, %c0_17] : memref<302x151xf32, #tpu.memory_space<vmem>>, vector<302x151xf32>
    %cst_18 = arith.constant dense<0.000000e+00> : vector<8x151xf32>
    %23 = tpu.matmul %19, %22, %cst_18 {dimension_numbers = #tpu.dot_dimension_numbers<[1], [0], [0], [1], [0, 0, 1, 1], [], []>} : vector<8x302xf32>, vector<302x151xf32>, vector<8x151xf32> -> vector<8x151xf32>
    %24 = arith.maximumf %21, %23 : vector<8x151xf32>
    %c0_19 = arith.constant 0 : index
    %c0_20 = arith.constant 0 : index
    %c0_21 = arith.constant 0 : index
    %25 = vector.load %arg3[%c0_19, %c0_20, %c0_21] : memref<3x8x8xf32, #tpu.memory_space<vmem>>, vector<1x8x8xf32>
    %26 = vector.shape_cast %25 : vector<1x8x8xf32> to vector<8x8xf32>
    %27 = vector.extract_strided_slice %24 {offsets = [0, 0], sizes = [8, 149], strides = [1, 1]} : vector<8x151xf32> to vector<8x149xf32>
    %cst_22 = arith.constant dense<0.000000e+00> : vector<8x149xf32>
    %28 = tpu.matmul %26, %27, %cst_22 {dimension_numbers = #tpu.dot_dimension_numbers<[1], [0], [0], [1], [0, 0, 1, 1], [], []>} : vector<8x8xf32>, vector<8x149xf32>, vector<8x149xf32> -> vector<8x149xf32>
    %c1_23 = arith.constant 1 : index
    %c0_24 = arith.constant 0 : index
    %c0_25 = arith.constant 0 : index
    %29 = vector.load %arg3[%c1_23, %c0_24, %c0_25] : memref<3x8x8xf32, #tpu.memory_space<vmem>>, vector<1x8x8xf32>
    %30 = vector.shape_cast %29 : vector<1x8x8xf32> to vector<8x8xf32>
    %31 = vector.extract_strided_slice %24 {offsets = [0, 1], sizes = [8, 149], strides = [1, 1]} : vector<8x151xf32> to vector<8x149xf32>
    %cst_26 = arith.constant dense<0.000000e+00> : vector<8x149xf32>
    %32 = tpu.matmul %30, %31, %cst_26 {dimension_numbers = #tpu.dot_dimension_numbers<[1], [0], [0], [1], [0, 0, 1, 1], [], []>} : vector<8x8xf32>, vector<8x149xf32>, vector<8x149xf32> -> vector<8x149xf32>
    %33 = arith.addf %28, %32 : vector<8x149xf32>
    %c2_27 = arith.constant 2 : index
    %c0_28 = arith.constant 0 : index
    %c0_29 = arith.constant 0 : index
    %34 = vector.load %arg3[%c2_27, %c0_28, %c0_29] : memref<3x8x8xf32, #tpu.memory_space<vmem>>, vector<1x8x8xf32>
    %35 = vector.shape_cast %34 : vector<1x8x8xf32> to vector<8x8xf32>
    %36 = vector.extract_strided_slice %24 {offsets = [0, 2], sizes = [8, 149], strides = [1, 1]} : vector<8x151xf32> to vector<8x149xf32>
    %cst_30 = arith.constant dense<0.000000e+00> : vector<8x149xf32>
    %37 = tpu.matmul %35, %36, %cst_30 {dimension_numbers = #tpu.dot_dimension_numbers<[1], [0], [0], [1], [0, 0, 1, 1], [], []>} : vector<8x8xf32>, vector<8x149xf32>, vector<8x149xf32> -> vector<8x149xf32>
    %38 = arith.addf %33, %37 : vector<8x149xf32>
    %c0_31 = arith.constant 0 : index
    %c0_32 = arith.constant 0 : index
    %39 = vector.load %arg4[%c0_31, %c0_32] : memref<8x1xf32, #tpu.memory_space<vmem>>, vector<8x1xf32>
    %40 = vector.broadcast %39 : vector<8x1xf32> to vector<8x149xf32>
    %41 = arith.addf %38, %40 : vector<8x149xf32>
    %cst_33 = arith.constant 0.000000e+00 : f32
    %42 = vector.broadcast %cst_33 : f32 to vector<8x149xf32>
    %43 = arith.maximumf %41, %42 : vector<8x149xf32>
    %c0_34 = arith.constant 0 : index
    %c0_35 = arith.constant 0 : index
    %44 = vector.load %arg11[%c0_34, %c0_35] : memref<149x74xf32, #tpu.memory_space<vmem>>, vector<149x74xf32>
    %cst_36 = arith.constant dense<0.000000e+00> : vector<8x74xf32>
    %45 = tpu.matmul %43, %44, %cst_36 {dimension_numbers = #tpu.dot_dimension_numbers<[1], [0], [0], [1], [0, 0, 1, 1], [], []>} : vector<8x149xf32>, vector<149x74xf32>, vector<8x74xf32> -> vector<8x74xf32>
    %c0_37 = arith.constant 0 : index
    %c0_38 = arith.constant 0 : index
    %46 = vector.load %arg12[%c0_37, %c0_38] : memref<149x74xf32, #tpu.memory_space<vmem>>, vector<149x74xf32>
    %cst_39 = arith.constant dense<0.000000e+00> : vector<8x74xf32>
    %47 = tpu.matmul %43, %46, %cst_39 {dimension_numbers = #tpu.dot_dimension_numbers<[1], [0], [0], [1], [0, 0, 1, 1], [], []>} : vector<8x149xf32>, vector<149x74xf32>, vector<8x74xf32> -> vector<8x74xf32>
    %48 = arith.maximumf %45, %47 : vector<8x74xf32>
    %c0_40 = arith.constant 0 : index
    %c0_41 = arith.constant 0 : index
    %49 = vector.load %arg5[%c0_40, %c0_41] : memref<16x8xf32, #tpu.memory_space<vmem>>, vector<16x8xf32>
    %cst_42 = arith.constant dense<0.000000e+00> : vector<16x74xf32>
    %50 = tpu.matmul %49, %48, %cst_42 {dimension_numbers = #tpu.dot_dimension_numbers<[1], [0], [0], [1], [0, 0, 1, 1], [], []>} : vector<16x8xf32>, vector<8x74xf32>, vector<16x74xf32> -> vector<16x74xf32>
    %c0_43 = arith.constant 0 : index
    %c0_44 = arith.constant 0 : index
    %51 = vector.load %arg6[%c0_43, %c0_44] : memref<16x1xf32, #tpu.memory_space<vmem>>, vector<16x1xf32>
    %52 = vector.broadcast %51 : vector<16x1xf32> to vector<16x74xf32>
    %53 = arith.addf %50, %52 : vector<16x74xf32>
    %cst_45 = arith.constant 0.000000e+00 : f32
    %54 = vector.broadcast %cst_45 : f32 to vector<16x74xf32>
    %55 = arith.maximumf %53, %54 : vector<16x74xf32>
    %c0_46 = arith.constant 0 : index
    %c0_47 = arith.constant 0 : index
    %56 = vector.load %arg7[%c0_46, %c0_47] : memref<24x16xf32, #tpu.memory_space<vmem>>, vector<24x16xf32>
    %cst_48 = arith.constant dense<0.000000e+00> : vector<24x74xf32>
    %57 = tpu.matmul %56, %55, %cst_48 {dimension_numbers = #tpu.dot_dimension_numbers<[1], [0], [0], [1], [0, 0, 1, 1], [], []>} : vector<24x16xf32>, vector<16x74xf32>, vector<24x74xf32> -> vector<24x74xf32>
    %c0_49 = arith.constant 0 : index
    %c0_50 = arith.constant 0 : index
    %58 = vector.load %arg8[%c0_49, %c0_50] : memref<24x1xf32, #tpu.memory_space<vmem>>, vector<24x1xf32>
    %59 = vector.broadcast %58 : vector<24x1xf32> to vector<24x74xf32>
    %60 = arith.addf %57, %59 : vector<24x74xf32>
    %cst_51 = arith.constant 0.000000e+00 : f32
    %61 = vector.broadcast %cst_51 : f32 to vector<24x74xf32>
    %62 = arith.maximumf %60, %61 : vector<24x74xf32>
    %c0_52 = arith.constant 0 : index
    %c0_53 = arith.constant 0 : index
    %63 = vector.load %arg13[%c0_52, %c0_53] : memref<24x74xf32, #tpu.memory_space<vmem>>, vector<24x74xf32>
    %64 = arith.mulf %62, %63 : vector<24x74xf32>
    %c0_54 = arith.constant 0 : index
    %c0_55 = arith.constant 0 : index
    %65 = vector.load %arg14[%c0_54, %c0_55] : memref<74x2xf32, #tpu.memory_space<vmem>>, vector<74x2xf32>
    %cst_56 = arith.constant dense<0.000000e+00> : vector<24x2xf32>
    %66 = tpu.matmul %64, %65, %cst_56 {dimension_numbers = #tpu.dot_dimension_numbers<[1], [0], [0], [1], [0, 0, 1, 1], [], []>} : vector<24x74xf32>, vector<74x2xf32>, vector<24x2xf32> -> vector<24x2xf32>
    %cst_57 = arith.constant dense<0.000000e+00> : vector<2xf32>
    %67 = vector.multi_reduction <add>, %66, %cst_57 [0] : vector<24x2xf32> to vector<2xf32>
    %68 = vector.shape_cast %67 : vector<2xf32> to vector<1x2xf32>
    %c0_58 = arith.constant 0 : index
    %c0_59 = arith.constant 0 : index
    %69 = vector.load %arg15[%c0_58, %c0_59] : memref<1x1xf32, #tpu.memory_space<vmem>>, vector<1x1xf32>
    %70 = vector.broadcast %69 : vector<1x1xf32> to vector<1x2xf32>
    %71 = arith.addf %68, %70 : vector<1x2xf32>
    %c0_60 = arith.constant 0 : index
    %c0_61 = arith.constant 0 : index
    %72 = vector.load %arg16[%c0_60, %c0_61] : memref<1x2xf32, #tpu.memory_space<vmem>>, vector<1x2xf32>
    tpu.vector_store %arg16[%c0_60, %c0_61], %71 {strides = array<i32>} : memref<1x2xf32, #tpu.memory_space<vmem>>, vector<1x2xf32>,
    return
  }
}

</mosaic_0001>

<bundles_post_ra>
// kernel: tpu_custom_call.1
= control target key start
LH: loop header
LB: loop body
LE: loop exit
PB: predicated region body
PF: predicated region fallthrough
CT: control target
= control target key end

     0   :  { %s3118_s0 = inlined_call_operand.vmem [shape: f32[3,304], index: 0, kind: input, shape index: {}]   ;;  %s3119_s1 = inlined_call_operand.vmem [shape: f32[3,8,3], index: 1, kind: input, shape index: {}]   ;;  %s3120_s2 = inlined_call_operand.vmem [shape: f32[8,1], index: 2, kind: input, shape index: {}]   ;;  %s3121_s3 = inlined_call_operand.vmem [shape: f32[3,8,8], index: 3, kind: input, shape index: {}]   ;;  %s3122_s4 = inlined_call_operand.vmem [shape: f32[8,1], index: 4, kind: input, shape index: {}]   ;;  %s3123_s5 = inlined_call_operand.vmem [shape: f32[16,8], index: 5, kind: input, shape index: {}]   ;;  %s3124_s6 = inlined_call_operand.vmem [shape: f32[16,1], index: 6, kind: input, shape index: {}]   ;;  %s3125_s7 = inlined_call_operand.vmem [shape: f32[24,16], index: 7, kind: input, shape index: {}]   ;;  %s3126_s8 = inlined_call_operand.vmem [shape: f32[24,1], index: 8, kind: input, shape index: {}]   ;;  %s3127_s9 = inlined_call_operand.vmem [shape: f32[302,151], index: 9, kind: input, shape index: {}]   ;;  %s3128_s10 = inlined_call_operand.vmem [shape: f32[302,151], index: 10, kind: input, shape index: {}]   ;;  %s3129_s11 = inlined_call_operand.vmem [shape: f32[149,74], index: 11, kind: input, shape index: {}]   ;;  %s3130_s12 = inlined_call_operand.vmem [shape: f32[149,74], index: 12, kind: input, shape index: {}]   ;;  %s3131_s13 = inlined_call_operand.vmem [shape: f32[24,74], index: 13, kind: input, shape index: {}]   ;;  %s3132_s14 = inlined_call_operand.vmem [shape: f32[74,2], index: 14, kind: input, shape index: {}]   ;;  %s3133_s15 = inlined_call_operand.<no memory space> [shape: f32[1,1], index: 15, kind: input, shape index: {}]   ;;  %s3134_s16 = inlined_call_operand.hbm [shape: f32[1,2], index: 16, kind: output, shape index: {}]  }
   0x1   :  { %3136 = sst [smem:[#allocation6_spill]] %s3118_s0  ;;  %v21_v0 = vstv %s3133_s15 }
   0x2   :  { %22 = vst [vmem:[#allocation2] sm:$0x1] %v21_v0 }
   0x3   :  { %s3137_s25 = sld [smem:[#allocation6_spill]]  ;;  %s2218_s26 = smov 127   ;;  %v2219_v3 = vmov 0.0  }
   0x4   :  { %1880 = vmatprep.subr.mxu1 %v2219_v3  ;;  %148 = vmatprep.mubr.f32.mxu0 %v2219_v3 }
   0x9   :  { %v56_v1 = vld [vmem:[%s3137_s25] sm:$0x77] }
   0xa   :  { %64 = vrot.lane.b32.xlu1 %v56_v1, %s2218_s26  ;;  %v63_v2 = vcombine.high %v56_v1, %v56_v1 }
   0xb   :  { %23 = vsyncpa [#allocation4], 0  ;;  %vm2220_vm0 = vmmov 0   ;;  %v57_v4 = vld [vmem:[%s3137_s25 + $0x8] sm:$0x7]  ;;  %s2221_s28 = smov 126  }
   0xc   :  { %66 = vrot.lane.b32.xlu0 %v63_v2, %s2218_s26  ;;  %1882 = vmatprep.mubr.msk.f32.mxu1 %vm2220_vm0, %v2219_v3  ;;  %v539_v5 = vld [vmem:[%s3120_s2] sm:$0xff]  ;;  %v2222_v6 = vmov 0   ;;  %vm77_vm1 = vcmask 1042432   ;;  %vm70_vm2 = vcmask 1039360   ;;  %v1812_v11 = vld [vmem:[%s3119_s1 + $0x8] sm:$0xff]  ;;  %vm73_vm3 = vcmask 23552  }
   0xd   :  { %2191 = vset.pattern.permute.xlu0 %v2222_v6  ;;  %2192 = vset.pattern.permute.xlu1 %v2222_v6  ;;  %vm383_vm4 = vcmask 1031168   ;;  %v781_v14 = vld [vmem:[%s3128_s10 + $0x8] sm:$0xff]  ;;  %v783_v15 = vld [vmem:[%s3128_s10 + $0x18] sm:$0xff]  ;;  %v58_v18 = vld [vmem:[%s3119_s1] sm:$0xff]  ;;  %vm631_vm5 = vcmask 1045504   ;;  %vm2223_vm6 = vmmov 1  }
   0xe   :  { %379 = vrot.lane.b32.xlu1 %v63_v2, %s2221_s28  ;;  %v552_v19 = vld [vmem:[%s3127_s9 + $0x8] sm:$0xff]  ;;  %v2020_v20 = vpack.c.bf16 %v783_v15, %v781_v14  ;;  %v554_v22 = vld [vmem:[%s3127_s9 + $0x18] sm:$0xff]  ;;  %v780_v23 = vld [vmem:[%s3128_s10] sm:$0xff]  ;;  %vm627_vm8 = vcmask 375808   ;;  %vm1018_vm9 = vcmask 64512   ;;  %vm1285_vm10 = vcmask 1044480  }
   0xf   :  { %v782_v24 = vld [vmem:[%s3128_s10 + $0x10] sm:$0xff]  ;;  %v785_v25 = vld [vmem:[%s3128_s10 + $0x28] sm:$0xff]  ;;  %v787_v26 = vld [vmem:[%s3128_s10 + $0x38] sm:$0xff]  ;;  %v1942_v29 = vpack.c.bf16 %v554_v22, %v552_v19  ;;  %vm1281_vm11 = vcmask 171008   ;;  %vm1570_vm12 = vcmask 130048   ;;  %vm1689_vm13 = vcmask 1041408  }
  0x10   :  { %68 = vrot.lane.b32.xlu0 %v57_v4, %s2218_s26  ;;  %v1823_v27 = vld [vmem:[%s3119_s1 + $0x10] sm:$0xff]  ;;  %v2022_v30 = vpack.c.bf16 %v782_v24, %v780_v23  ;;  %v2024_v31 = vpack.c.bf16 %v787_v26, %v785_v25  ;;  %v784_v32 = vld [vmem:[%s3128_s10 + $0x20] sm:$0xff]  ;;  %v789_v34 = vld [vmem:[%s3128_s10 + $0x48] sm:$0xff]  ;;  %vm1679_vm15 = vcmask 605184  }
  0x11   :  { %v786_v33 = vld [vmem:[%s3128_s10 + $0x30] sm:$0xff]  ;;  %v791_v35 = vld [vmem:[%s3128_s10 + $0x58] sm:$0xff]  ;;  %v551_v36 = vld [vmem:[%s3127_s9] sm:$0xff] }
  0x12   :  { %377 = vrot.lane.b32.xlu1 %v56_v1, %s2221_s28  ;;  %v553_v37 = vld [vmem:[%s3127_s9 + $0x10] sm:$0xff]  ;;  %v556_v38 = vld [vmem:[%s3127_s9 + $0x28] sm:$0xff]  ;;  %v2026_v39 = vpack.c.bf16 %v786_v33, %v784_v32  ;;  %v558_v40 = vld [vmem:[%s3127_s9 + $0x38] sm:$0xff]  ;;  %v2028_v41 = vpack.c.bf16 %v791_v35, %v789_v34 }
  0x13   :  { %v788_v42 = vld [vmem:[%s3128_s10 + $0x40] sm:$0xff]  ;;  %v790_v43 = vld [vmem:[%s3128_s10 + $0x50] sm:$0xff]  ;;  %v793_v44 = vld [vmem:[%s3128_s10 + $0x68] sm:$0xff]  ;;  %v1944_v46 = vpack.c.bf16 %v553_v37, %v551_v36  ;;  %v1946_v47 = vpack.c.bf16 %v558_v40, %v556_v38 }
  0x14   :  { %381 = vrot.lane.b32.xlu0 %v57_v4, %s2221_s28  ;;  %v795_v45 = vld [vmem:[%s3128_s10 + $0x78] sm:$0xff]  ;;  %v555_v48 = vld [vmem:[%s3127_s9 + $0x20] sm:$0xff]  ;;  %v557_v49 = vld [vmem:[%s3127_s9 + $0x30] sm:$0xff]  ;;  %v2030_v51 = vpack.c.bf16 %v790_v43, %v788_v42 }
  0x15   :  { %v560_v50 = vld [vmem:[%s3127_s9 + $0x48] sm:$0xff]  ;;  %v562_v52 = vld [vmem:[%s3127_s9 + $0x58] sm:$0xff]  ;;  %v2032_v53 = vpack.c.bf16 %v795_v45, %v793_v44  ;;  %v792_v54 = vld [vmem:[%s3128_s10 + $0x60] sm:$0xff]  ;;  %v1948_v58 = vpack.c.bf16 %v557_v49, %v555_v48 }
  0x16   :  { %v794_v55 = vld [vmem:[%s3128_s10 + $0x70] sm:$0xff]  ;;  %v797_v56 = vld [vmem:[%s3128_s10 + $0x88] sm:$0xff]  ;;  %v799_v57 = vld [vmem:[%s3128_s10 + $0x98] sm:$0xff]  ;;  %v1950_v59 = vpack.c.bf16 %v562_v52, %v560_v50 }
  0x17   :  { %v559_v60 = vld [vmem:[%s3127_s9 + $0x40] sm:$0xff]  ;;  %v561_v61 = vld [vmem:[%s3127_s9 + $0x50] sm:$0xff]  ;;  %v564_v62 = vld [vmem:[%s3127_s9 + $0x68] sm:$0xff]  ;;  %v2034_v63 = vpack.c.bf16 %v794_v55, %v792_v54 }
  0x18   :  { %542 = vperm.xlu0 %2191, %v539_v5   ;;  %v566_v0 = vld [vmem:[%s3127_s9 + $0x78] sm:$0xff]  ;;  %v801_v5 = vld [vmem:[%s3128_s10 + $0xa8] sm:$0xff]  ;;  %v800_v15 = vld [vmem:[%s3128_s10 + $0xa0] sm:$0xff] }
  0x19   :  { %v803_v6 = vld [vmem:[%s3128_s10 + $0xb8] sm:$0xff]  ;;  %v569_v22 = vld [vmem:[%s3127_s9 + $0x90] sm:$0xff]  ;;  %v572_v23 = vld [vmem:[%s3127_s9 + $0xa8] sm:$0xff] }
  0x1a   :  { %v2040_v14 = vpack.c.bf16 %v803_v6, %v801_v5  ;;  %v574_v25 = vld [vmem:[%s3127_s9 + $0xb8] sm:$0xff]  ;;  %v571_v33 = vld [vmem:[%s3127_s9 + $0xa0] sm:$0xff]  ;;  %v573_v34 = vld [vmem:[%s3127_s9 + $0xb0] sm:$0xff] }
  0x1b   :  { %v1962_v32 = vpack.c.bf16 %v574_v25, %v572_v23  ;;  %v576_v35 = vld [vmem:[%s3127_s9 + $0xc8] sm:$0xff]  ;;  %v578_v37 = vld [vmem:[%s3127_s9 + $0xd8] sm:$0xff]  ;;  %v810_v40 = vld [vmem:[%s3128_s10 + $0xf0] sm:$0xff]  ;;  %v1964_v43 = vpack.c.bf16 %v573_v34, %v571_v33 }
  0x1c   :  { %v815_v42 = vld [vmem:[%s3128_s10 + $0x118] sm:$0xff]  ;;  %v1966_v44 = vpack.c.bf16 %v578_v37, %v576_v35  ;;  %v575_v45 = vld [vmem:[%s3127_s9 + $0xc0] sm:$0xff]  ;;  %v814_v52 = vld [vmem:[%s3128_s10 + $0x110] sm:$0xff] }
  0x1d   :  { %v582_v49 = vld [vmem:[%s3127_s9 + $0xf8] sm:$0xff]  ;;  %v583_v6 = vld [vmem:[%s3127_s9 + $0x100] sm:$0xff]  ;;  %v826_v25 = vld [vmem:[%s3128_s10 + $0x170] sm:$0xff] }
  0x1e   :  { %v819_v54 = vld [vmem:[%s3128_s10 + $0x138] sm:$0xff]  ;;  %v830_v37 = vld [vmem:[%s3128_s10 + $0x190] sm:$0xff]  ;;  %vm2791_vm7 = vmpackc.low %vm631_vm5, %vm2223_vm6 }
  0x1f   :  { %v598_v34 = vld [vmem:[%s3127_s9 + $0x178] sm:$0xff]  ;;  %vm2169_vm14 = vmpackc.low %vm1689_vm13, %vm2223_vm6 }
  0x7c   :  { %v65_v8 = vpop.permute.xlu1 %64 }
  0x7e   :  { %v67_v7 = vpop.permute.xlu0 %66 }
  0x7f   :  { %v71_v13 = vsel %vm70_vm2, %v65_v8, %v67_v7  ;;  %v1954_v8 = vpack.c.bf16 %v566_v0, %v564_v62  ;;  %v818_v0 = vld [vmem:[%s3128_s10 + $0x130] sm:$0xff] }
  0x80   :  { %v380_v12 = vpop.permute.xlu1 %379 }
  0x82   :  { %v69_v9 = vpop.permute.xlu0 %68 }
  0x83   :  { %1881 = vmatpush3.msk.msra.mxu1 %vm77_vm1, %v69_v9  ;;  %v72_v10 = vsel %vm70_vm2, %v67_v7, %v69_v9  ;;  %v1952_v7 = vpack.c.bf16 %v561_v61, %v559_v60  ;;  %v563_v9 = vld [vmem:[%s3127_s9 + $0x60] sm:$0xff]  ;;  %v586_v61 = vld [vmem:[%s3127_s9 + $0x118] sm:$0xff] }
  0x84   :  { %1813 = vmatprep.subr.msk.mxu0 %vm77_vm1, %v72_v10  ;;  %1883 = vmatmul.mubr.msk.f32.vlgmr.msra.gmra.mrb[0].mxu1 %vm73_vm3, %v1812_v11  ;;  %v378_v21 = vpop.permute.xlu1 %377  ;;  %v565_v10 = vld [vmem:[%s3127_s9 + $0x70] sm:$0xff] }
  0x85   :  { %1814 = vmatpush1.msk.msra.mxu0 %vm77_vm1, %v71_v13  ;;  %1885 = vmatprep.subr.mxu1 %v2219_v3  ;;  %v384_v28 = vsel %vm383_vm4, %v378_v21, %v380_v12  ;;  %v570_v13 = vld [vmem:[%s3127_s9 + $0x98] sm:$0xff]  ;;  %v1956_v19 = vpack.c.bf16 %v565_v10, %v563_v9  ;;  %v567_v21 = vld [vmem:[%s3127_s9 + $0x80] sm:$0xff] }
  0x86   :  { %1815 = vmatmul.mubr.msk.f32.vlgmr.msra.gmra.mrb[0].mxu0 %vm73_vm3, %v1812_v11  ;;  %1818 = vmatprep.subr.msk.mxu0 %vm77_vm1, %v63_v2  ;;  %v382_v16 = vpop.permute.xlu0 %381  ;;  %v796_v2 = vld [vmem:[%s3128_s10 + $0x80] sm:$0xff]  ;;  %v568_v11 = vld [vmem:[%s3127_s9 + $0x88] sm:$0xff]  ;;  %v590_v10 = vld [vmem:[%s3127_s9 + $0x138] sm:$0xff] }
  0x87   :  { %1819 = vmatpush1.msk.msra.mxu0 %vm77_vm1, %v56_v1  ;;  %v385_v17 = vsel %vm383_vm4, %v380_v12, %v382_v16  ;;  %298 = vmatprep.mubr.f32.mxu0 %v2219_v3  ;;  %v2036_v1 = vpack.c.bf16 %v799_v57, %v797_v56  ;;  %v579_v57 = vld [vmem:[%s3127_s9 + $0xe0] sm:$0xff] }
  0x88   :  { %1886 = vmatpush3.msk.msra.mxu1 %vm77_vm1, %v57_v4  ;;  %1824 = vmatprep.subr.msk.mxu0 %vm77_vm1, %v385_v17  ;;  %v798_v4 = vld [vmem:[%s3128_s10 + $0x90] sm:$0xff]  ;;  %v805_v17 = vld [vmem:[%s3128_s10 + $0xc8] sm:$0xff] }
  0x89   :  { %1887 = vmatprep.mubr.msk.f32.mxu1 %vm2220_vm0, %v2219_v3  ;;  %1890 = vmatprep.subr.mxu1 %v2219_v3  ;;  %v2038_v12 = vpack.c.bf16 %v798_v4, %v796_v2  ;;  %v823_v2 = vld [vmem:[%s3128_s10 + $0x158] sm:$0xff] }
  0x8a   :  { %1888 = vmatmul.mubr.msk.f32.vlgmr.msra.gmra.mrb[2].mxu1 %vm73_vm3, %v58_v18 }
  0x8b   :  { %1891 = vmatpush3.msk.msra.mxu1 %vm77_vm1, %v382_v16  ;;  %1892 = vmatprep.mubr.msk.f32.mxu1 %vm2220_vm0, %v2219_v3  ;;  %v802_v16 = vld [vmem:[%s3128_s10 + $0xb0] sm:$0xff] }
  0x8c   :  { %2021 = vmatprep.subr.bf16.mxu1 %v2020_v20  ;;  %v1958_v20 = vpack.c.bf16 %v570_v13, %v568_v11  ;;  %v2042_v24 = vpack.c.bf16 %v802_v16, %v800_v15  ;;  %v822_v13 = vld [vmem:[%s3128_s10 + $0x150] sm:$0xff]  ;;  %v827_v15 = vld [vmem:[%s3128_s10 + $0x178] sm:$0xff] }
  0x8e   :  { %1820 = vmatmul.mubr.msk.f32.vlgmr.msra.gmra.mrb[0].mxu0 %vm73_vm3, %v58_v18  ;;  %1893 = vmatmul.mubr.msk.f32.vlgmr.msra.gmra.mrb[4].mxu1 %vm73_vm3, %v1823_v27  ;;  %v807_v18 = vld [vmem:[%s3128_s10 + $0xd8] sm:$0xff] }
  0x8f   :  { %1825 = vmatpush1.msk.msra.mxu0 %vm77_vm1, %v384_v28  ;;  %459 = vmatprep.mubr.f32.mxu0 %v2219_v3  ;;  %v2044_v26 = vpack.c.bf16 %v807_v18, %v805_v17  ;;  %v806_v28 = vld [vmem:[%s3128_s10 + $0xd0] sm:$0xff]  ;;  %v587_v18 = vld [vmem:[%s3127_s9 + $0x120] sm:$0xff]  ;;  %vm1773_vm1 = vcmask 15360  }
  0x90   :  { %1943 = vmatprep.subr.bf16.mxu0 %v1942_v29  ;;  %2023 = vmatpush1.bf16.msra.mxu1 %v2022_v30  ;;  %v809_v29 = vld [vmem:[%s3128_s10 + $0xe8] sm:$0xff]  ;;  %v811_v30 = vld [vmem:[%s3128_s10 + $0xf8] sm:$0xff] }
  0x91   :  { %2025 = vmatprep.subr.bf16.mxu1 %v2024_v31  ;;  %v1960_v31 = vpack.c.bf16 %v569_v22, %v567_v21  ;;  %v2048_v38 = vpack.c.bf16 %v811_v30, %v809_v29  ;;  %v594_v22 = vld [vmem:[%s3127_s9 + $0x158] sm:$0xff]  ;;  %v591_v30 = vld [vmem:[%s3127_s9 + $0x140] sm:$0xff] }
  0x94   :  { %2027 = vmatpush1.bf16.msra.mxu1 %v2026_v39  ;;  %v808_v39 = vld [vmem:[%s3128_s10 + $0xe0] sm:$0xff] }
  0x95   :  { %2029 = vmatprep.subr.bf16.mxu1 %v2028_v41  ;;  %v813_v41 = vld [vmem:[%s3128_s10 + $0x108] sm:$0xff]  ;;  %v2050_v48 = vpack.c.bf16 %v810_v40, %v808_v39  ;;  %v595_v40 = vld [vmem:[%s3127_s9 + $0x160] sm:$0xff] }
  0x96   :  { %1826 = vmatmul.mubr.msk.f32.vlgmr.msra.gmra.mrb[0].mxu0 %vm73_vm3, %v1823_v27  ;;  %v804_v27 = vld [vmem:[%s3128_s10 + $0xc0] sm:$0xff]  ;;  %v2052_v50 = vpack.c.bf16 %v815_v42, %v813_v41  ;;  %v597_v41 = vld [vmem:[%s3127_s9 + $0x170] sm:$0xff] }
  0x97   :  { %1945 = vmatpush1.bf16.msra.mxu0 %v1944_v46  ;;  %v2046_v36 = vpack.c.bf16 %v806_v28, %v804_v27  ;;  %v577_v46 = vld [vmem:[%s3127_s9 + $0xd0] sm:$0xff]  ;;  %v831_v27 = vld [vmem:[%s3128_s10 + $0x198] sm:$0xff] }
  0x98   :  { %1947 = vmatprep.subr.bf16.mxu0 %v1946_v47  ;;  %2031 = vmatpush1.bf16.msra.mxu1 %v2030_v51  ;;  %v580_v47 = vld [vmem:[%s3127_s9 + $0xe8] sm:$0xff]  ;;  %v812_v51 = vld [vmem:[%s3128_s10 + $0x100] sm:$0xff]  ;;  %v1968_v55 = vpack.c.bf16 %v577_v46, %v575_v45  ;;  %v1988_v45 = vpack.c.bf16 %v597_v41, %v595_v40 }
  0x99   :  { %2033 = vmatprep.subr.bf16.mxu1 %v2032_v53  ;;  %v817_v53 = vld [vmem:[%s3128_s10 + $0x128] sm:$0xff]  ;;  %v1970_v56 = vpack.c.bf16 %v582_v49, %v580_v47  ;;  %v2054_v60 = vpack.c.bf16 %v814_v52, %v812_v51  ;;  %v599_v47 = vld [vmem:[%s3127_s9 + $0x180] sm:$0xff] }
  0x9a   :  { %v2056_v62 = vpack.c.bf16 %v819_v54, %v817_v53  ;;  %v604_v49 = vld [vmem:[%s3127_s9 + $0x1a8] sm:$0xff]  ;;  %v603_v53 = vld [vmem:[%s3127_s9 + $0x1a0] sm:$0xff]  ;;  %v605_v54 = vld [vmem:[%s3127_s9 + $0x1b0] sm:$0xff] }
  0x9b   :  { %1949 = vmatpush1.bf16.msra.mxu0 %v1948_v58  ;;  %v581_v58 = vld [vmem:[%s3127_s9 + $0xf0] sm:$0xff]  ;;  %v620_v41 = vld [vmem:[%s3127_s9 + $0x228] sm:$0xff] }
  0x9c   :  { %1951 = vmatprep.subr.bf16.mxu0 %v1950_v59  ;;  %2035 = vmatpush1.bf16.msra.mxu1 %v2034_v63  ;;  %v584_v59 = vld [vmem:[%s3127_s9 + $0x108] sm:$0xff]  ;;  %v816_v63 = vld [vmem:[%s3128_s10 + $0x120] sm:$0xff]  ;;  %v1972_v4 = vpack.c.bf16 %v581_v58, %v579_v57  ;;  %v835_v57 = vld [vmem:[%s3128_s10 + $0x1b8] sm:$0xff] }
  0x9d   :  { %2037 = vmatprep.subr.bf16.mxu1 %v2036_v1  ;;  %v821_v1 = vld [vmem:[%s3128_s10 + $0x148] sm:$0xff]  ;;  %v1974_v5 = vpack.c.bf16 %v586_v61, %v584_v59  ;;  %v2058_v9 = vpack.c.bf16 %v818_v0, %v816_v63  ;;  %v832_v58 = vld [vmem:[%s3128_s10 + $0x1a0] sm:$0xff]  ;;  %v834_v59 = vld [vmem:[%s3128_s10 + $0x1b0] sm:$0xff] }
  0x9e   :  { %v2060_v11 = vpack.c.bf16 %v823_v2, %v821_v1  ;;  %v2074_v61 = vpack.c.bf16 %v834_v59, %v832_v58  ;;  %v610_v63 = vld [vmem:[%s3127_s9 + $0x1d8] sm:$0xff]  ;;  %v607_v1 = vld [vmem:[%s3127_s9 + $0x1c0] sm:$0xff]  ;;  %v609_v2 = vld [vmem:[%s3127_s9 + $0x1d0] sm:$0xff] }
  0x9f   :  { %1953 = vmatpush1.bf16.msra.mxu0 %v1952_v7  ;;  %v585_v7 = vld [vmem:[%s3127_s9 + $0x110] sm:$0xff] }
  0xa0   :  { %1955 = vmatprep.subr.bf16.mxu0 %v1954_v8  ;;  %2039 = vmatpush1.bf16.msra.mxu1 %v2038_v12  ;;  %v588_v8 = vld [vmem:[%s3127_s9 + $0x128] sm:$0xff]  ;;  %v820_v12 = vld [vmem:[%s3128_s10 + $0x140] sm:$0xff]  ;;  %v1976_v16 = vpack.c.bf16 %v585_v7, %v583_v6  ;;  %v839_v6 = vld [vmem:[%s3128_s10 + $0x1d8] sm:$0xff] }
  0xa1   :  { %2041 = vmatprep.subr.bf16.mxu1 %v2040_v14  ;;  %v825_v14 = vld [vmem:[%s3128_s10 + $0x168] sm:$0xff]  ;;  %v1978_v17 = vpack.c.bf16 %v590_v10, %v588_v8  ;;  %v2062_v21 = vpack.c.bf16 %v822_v13, %v820_v12  ;;  %v836_v8 = vld [vmem:[%s3128_s10 + $0x1c0] sm:$0xff]  ;;  %v614_v12 = vld [vmem:[%s3127_s9 + $0x1f8] sm:$0xff] }
  0xa2   :  { %v2064_v23 = vpack.c.bf16 %v827_v15, %v825_v14  ;;  %v611_v14 = vld [vmem:[%s3127_s9 + $0x1e0] sm:$0xff]  ;;  %v613_v15 = vld [vmem:[%s3127_s9 + $0x1f0] sm:$0xff] }
  0xa3   :  { %1957 = vmatpush1.bf16.msra.mxu0 %v1956_v19  ;;  %v589_v19 = vld [vmem:[%s3127_s9 + $0x130] sm:$0xff] }
  0xa4   :  { %1959 = vmatprep.subr.bf16.mxu0 %v1958_v20  ;;  %2043 = vmatpush1.bf16.msra.mxu1 %v2042_v24  ;;  %v592_v20 = vld [vmem:[%s3127_s9 + $0x148] sm:$0xff]  ;;  %v824_v24 = vld [vmem:[%s3128_s10 + $0x160] sm:$0xff]  ;;  %v1980_v28 = vpack.c.bf16 %v589_v19, %v587_v18  ;;  %v843_v18 = vld [vmem:[%s3128_s10 + $0x1f8] sm:$0xff] }
  0xa5   :  { %2045 = vmatprep.subr.bf16.mxu1 %v2044_v26  ;;  %v829_v26 = vld [vmem:[%s3128_s10 + $0x188] sm:$0xff]  ;;  %v1982_v29 = vpack.c.bf16 %v594_v22, %v592_v20  ;;  %v2066_v33 = vpack.c.bf16 %v826_v25, %v824_v24  ;;  %v840_v19 = vld [vmem:[%s3128_s10 + $0x1e0] sm:$0xff]  ;;  %v842_v20 = vld [vmem:[%s3128_s10 + $0x1f0] sm:$0xff] }
  0xa6   :  { %v2068_v35 = vpack.c.bf16 %v831_v27, %v829_v26  ;;  %v2082_v22 = vpack.c.bf16 %v842_v20, %v840_v19  ;;  %v618_v24 = vld [vmem:[%s3127_s9 + $0x218] sm:$0xff] }
  0xa7   :  { %1961 = vmatpush1.bf16.msra.mxu0 %v1960_v31  ;;  %v593_v31 = vld [vmem:[%s3127_s9 + $0x150] sm:$0xff] }
  0xa8   :  { %1963 = vmatprep.subr.bf16.mxu0 %v1962_v32  ;;  %2047 = vmatpush1.bf16.msra.mxu1 %v2046_v36  ;;  %v596_v32 = vld [vmem:[%s3127_s9 + $0x168] sm:$0xff]  ;;  %v828_v36 = vld [vmem:[%s3128_s10 + $0x180] sm:$0xff] }
  0xa9   :  { %2049 = vmatprep.subr.bf16.mxu1 %v2048_v38  ;;  %v1984_v38 = vpack.c.bf16 %v593_v31, %v591_v30  ;;  %v1986_v39 = vpack.c.bf16 %v598_v34, %v596_v32  ;;  %v2070_v42 = vpack.c.bf16 %v830_v37, %v828_v36  ;;  %v543_v34 = vpop.permute.xlu0 %542 }
  0xab   :  { %1965 = vmatpush1.bf16.msra.mxu0 %v1964_v43  ;;  %v600_v43 = vld [vmem:[%s3127_s9 + $0x188] sm:$0xff] }
  0xac   :  { %1967 = vmatprep.subr.bf16.mxu0 %v1966_v44  ;;  %2051 = vmatpush1.bf16.msra.mxu1 %v2050_v48  ;;  %v602_v44 = vld [vmem:[%s3127_s9 + $0x198] sm:$0xff]  ;;  %v601_v48 = vld [vmem:[%s3127_s9 + $0x190] sm:$0xff] }
  0xad   :  { %2053 = vmatprep.subr.bf16.mxu1 %v2052_v50  ;;  %v1990_v46 = vpack.c.bf16 %v602_v44, %v600_v43  ;;  %v606_v50 = vld [vmem:[%s3127_s9 + $0x1b8] sm:$0xff]  ;;  %v1992_v51 = vpack.c.bf16 %v601_v48, %v599_v47  ;;  %v619_v47 = vld [vmem:[%s3127_s9 + $0x220] sm:$0xff]  ;;  %v621_v48 = vld [vmem:[%s3127_s9 + $0x230] sm:$0xff] }
  0xae   :  { %v1994_v52 = vpack.c.bf16 %v606_v50, %v604_v49  ;;  %v624_v49 = vld [vmem:[%s3127_s9 + $0x248] sm:$0xff]  ;;  %v626_v50 = vld [vmem:[%s3127_s9 + $0x258] sm:$0x3f] }
  0xaf   :  { %1969 = vmatpush1.bf16.msra.mxu0 %v1968_v55  ;;  %v833_v55 = vld [vmem:[%s3128_s10 + $0x1a8] sm:$0xff] }
  0xb0   :  { %1971 = vmatprep.subr.bf16.mxu0 %v1970_v56  ;;  %2055 = vmatpush1.bf16.msra.mxu1 %v2054_v60  ;;  %v1996_v56 = vpack.c.bf16 %v605_v54, %v603_v53  ;;  %v2072_v60 = vpack.c.bf16 %v835_v57, %v833_v55  ;;  %v623_v53 = vld [vmem:[%s3127_s9 + $0x240] sm:$0xff]  ;;  %v625_v54 = vld [vmem:[%s3127_s9 + $0x250] sm:$0x3f]  ;;  %v847_v57 = vld [vmem:[%s3128_s10 + $0x218] sm:$0xff] }
  0xb1   :  { %2057 = vmatprep.subr.bf16.mxu1 %v2056_v62  ;;  %v608_v62 = vld [vmem:[%s3127_s9 + $0x1c8] sm:$0xff]  ;;  %v2017_v58 = vpack.c.bf16 %v625_v54, %v623_v53 }
  0xb2   :  { %v1998_v0 = vpack.c.bf16 %v610_v63, %v608_v62  ;;  %v846_v62 = vld [vmem:[%s3128_s10 + $0x210] sm:$0xff]  ;;  %v849_v63 = vld [vmem:[%s3128_s10 + $0x228] sm:$0xff] }
  0xb3   :  { %1973 = vmatpush1.bf16.msra.mxu0 %v1972_v4  ;;  %v837_v4 = vld [vmem:[%s3128_s10 + $0x1c8] sm:$0xff] }
  0xb4   :  { %1975 = vmatprep.subr.bf16.mxu0 %v1974_v5  ;;  %2059 = vmatpush1.bf16.msra.mxu1 %v2058_v9  ;;  %v2000_v5 = vpack.c.bf16 %v609_v2, %v607_v1  ;;  %v2076_v7 = vpack.c.bf16 %v839_v6, %v837_v4  ;;  %v838_v9 = vld [vmem:[%s3128_s10 + $0x1d0] sm:$0xff]  ;;  %v1835_v55 = vld [vmem:[%s3121_s3 + $0x8] sm:$0xff] }
  0xb5   :  { %2061 = vmatprep.subr.bf16.mxu1 %v2060_v11  ;;  %v2078_v10 = vpack.c.bf16 %v838_v9, %v836_v8  ;;  %v612_v11 = vld [vmem:[%s3127_s9 + $0x1e8] sm:$0xff]  ;;  %v850_v6 = vld [vmem:[%s3128_s10 + $0x230] sm:$0xff]  ;;  %v855_v8 = vld [vmem:[%s3128_s10 + $0x258] sm:$0x3f] }
  0xb6   :  { %v2002_v13 = vpack.c.bf16 %v614_v12, %v612_v11  ;;  %v852_v11 = vld [vmem:[%s3128_s10 + $0x240] sm:$0xff]  ;;  %v854_v12 = vld [vmem:[%s3128_s10 + $0x250] sm:$0x3f] }
  0xb7   :  { %1977 = vmatpush1.bf16.msra.mxu0 %v1976_v16  ;;  %v841_v16 = vld [vmem:[%s3128_s10 + $0x1e8] sm:$0xff] }
  0xb8   :  { %1979 = vmatprep.subr.bf16.mxu0 %v1978_v17  ;;  %2063 = vmatpush1.bf16.msra.mxu1 %v2062_v21  ;;  %v2004_v17 = vpack.c.bf16 %v613_v15, %v611_v14  ;;  %v2080_v21 = vpack.c.bf16 %v843_v18, %v841_v16 }
  0xb9   :  { %2065 = vmatprep.subr.bf16.mxu1 %v2064_v23  ;;  %v616_v23 = vld [vmem:[%s3127_s9 + $0x208] sm:$0xff] }
  0xba   :  { %v2006_v25 = vpack.c.bf16 %v618_v24, %v616_v23  ;;  %v1252_v24 = vld [vmem:[%s3122_s4] sm:$0xff] }
  0xbb   :  { %1981 = vmatpush1.bf16.msra.mxu0 %v1980_v28 }
  0xbc   :  { %1983 = vmatprep.subr.bf16.mxu0 %v1982_v29  ;;  %2067 = vmatpush1.bf16.msra.mxu1 %v2066_v33 }
  0xbd   :  { %2069 = vmatprep.subr.bf16.mxu1 %v2068_v35 }
  0xbf   :  { %1985 = vmatpush1.bf16.msra.mxu0 %v1984_v38  ;;  %v615_v38 = vld [vmem:[%s3127_s9 + $0x200] sm:$0xff] }
  0xc0   :  { %1987 = vmatprep.subr.bf16.mxu0 %v1986_v39  ;;  %2071 = vmatpush1.bf16.msra.mxu1 %v2070_v42  ;;  %v617_v39 = vld [vmem:[%s3127_s9 + $0x210] sm:$0xff]  ;;  %v622_v42 = vld [vmem:[%s3127_s9 + $0x238] sm:$0xff] }
  0xc1   :  { %2073 = vmatprep.subr.bf16.mxu1 %v2072_v60  ;;  %v2008_v44 = vpack.c.bf16 %v617_v39, %v615_v38  ;;  %v1268_v38 = vld [vmem:[%s3129_s11 + $0x30] sm:$0xff]  ;;  %v1269_v39 = vld [vmem:[%s3129_s11 + $0x38] sm:$0xff] }
  0xc3   :  { %1989 = vmatpush1.bf16.msra.mxu0 %v1988_v45 }
  0xc4   :  { %1991 = vmatprep.subr.bf16.mxu0 %v1990_v46  ;;  %2075 = vmatpush1.bf16.msra.mxu1 %v2074_v61  ;;  %v2010_v46 = vpack.c.bf16 %v622_v42, %v620_v41  ;;  %v844_v61 = vld [vmem:[%s3128_s10 + $0x200] sm:$0xff]  ;;  %v1271_v42 = vld [vmem:[%s3129_s11 + $0x48] sm:$0xff] }
  0xc5   :  { %2077 = vmatprep.subr.bf16.mxu1 %v2076_v7  ;;  %v2086_v1 = vpack.c.bf16 %v846_v62, %v844_v61  ;;  %v853_v7 = vld [vmem:[%s3128_s10 + $0x248] sm:$0xff]  ;;  %v1270_v41 = vld [vmem:[%s3129_s11 + $0x40] sm:$0xff] }
  0xc6   :  { %v1359_v61 = vld [vmem:[%s3130_s12] sm:$0xff]  ;;  %v1360_v62 = vld [vmem:[%s3130_s12 + $0x8] sm:$0xff] }
  0xc7   :  { %1993 = vmatpush1.bf16.msra.mxu0 %v1992_v51  ;;  %v2012_v51 = vpack.c.bf16 %v621_v48, %v619_v47  ;;  %v1274_v47 = vld [vmem:[%s3129_s11 + $0x60] sm:$0xff]  ;;  %v1275_v48 = vld [vmem:[%s3129_s11 + $0x68] sm:$0xff] }
  0xc8   :  { %1995 = vmatprep.subr.bf16.mxu0 %v1994_v52  ;;  %2079 = vmatpush1.bf16.msra.mxu1 %v2078_v10  ;;  %v2014_v52 = vpack.c.bf16 %v626_v50, %v624_v49  ;;  %v2092_v10 = vpack.c.bf16 %v855_v8, %v853_v7  ;;  %v2117_v49 = vpack.c.bf16 %v1275_v48, %v1274_v47  ;;  %v1276_v50 = vld [vmem:[%s3129_s11 + $0x70] sm:$0xff]  ;;  %v1453_v48 = vld [vmem:[%s3123_s5 + $0x8] sm:$0xff] }
  0xc9   :  { %2081 = vmatprep.subr.bf16.mxu1 %v2080_v21  ;;  %v1365_v8 = vld [vmem:[%s3130_s12 + $0x30] sm:$0xff] }
  0xcb   :  { %1997 = vmatpush1.bf16.msra.mxu0 %v1996_v56  ;;  %v845_v56 = vld [vmem:[%s3128_s10 + $0x208] sm:$0xff] }
  0xcc   :  { %1999 = vmatprep.subr.bf16.mxu0 %v1998_v0  ;;  %2083 = vmatpush1.bf16.msra.mxu1 %v2082_v22  ;;  %v2084_v60 = vpack.c.bf16 %v847_v57, %v845_v56  ;;  %v851_v0 = vld [vmem:[%s3128_s10 + $0x238] sm:$0xff] }
  0xcd   :  { %v2088_v4 = vpack.c.bf16 %v851_v0, %v849_v63  ;;  %v1838_v63 = vld [vmem:[%s3121_s3 + $0x10] sm:$0xff]  ;;  %v2126_v0 = vpack.c.bf16 %v1360_v62, %v1359_v61 }
  0xce   :  { %v1671_v62 = vld [vmem:[%s3132_s14 + $0x10] sm:$0xff] }
  0xcf   :  { %2001 = vmatpush1.bf16.msra.mxu0 %v2000_v5  ;;  %v848_v5 = vld [vmem:[%s3128_s10 + $0x220] sm:$0xff] }
  0xd0   :  { %2003 = vmatprep.subr.bf16.mxu0 %v2002_v13  ;;  %v2090_v9 = vpack.c.bf16 %v850_v6, %v848_v5  ;;  %v2095_v13 = vpack.c.bf16 %v854_v12, %v852_v11  ;;  %v1363_v5 = vld [vmem:[%s3130_s12 + $0x20] sm:$0xff]  ;;  %v1364_v6 = vld [vmem:[%s3130_s12 + $0x28] sm:$0xff] }
  0xd1   :  { %v2132_v7 = vpack.c.bf16 %v1364_v6, %v1363_v5  ;;  %v1367_v11 = vld [vmem:[%s3130_s12 + $0x40] sm:$0xff]  ;;  %v1368_v12 = vld [vmem:[%s3130_s12 + $0x48] sm:$0xff]  ;;  %v1551_v5 = vld [vmem:[%s3125_s7 + $0x10] sm:$0xff] }
  0xd3   :  { %2005 = vmatpush1.bf16.msra.mxu0 %v2004_v17 }
  0xd4   :  { %2007 = vmatprep.subr.bf16.mxu0 %v2006_v25  ;;  %v1455_v25 = vld [vmem:[%s3124_s6 + $0x8] sm:$0xff] }
 0x157   :  { %v221_v26 = vpop.f32.mrb[0].mxu1 }
 0x158   :  { %v1884_v27 = vpop.f32.mrb[1].mxu1 }
 0x159   :  { %v1785_v27 = vld [vmem:[#allocation2] sm:$0x1] }
 0x15d   :  { %v371_v28 = vpop.f32.mrb[2].mxu1 }
 0x15e   :  { %v372_v29 = vadd.f32 %v371_v28, %v221_v26  ;;  %v1889_v30 = vpop.f32.mrb[3].mxu1  ;;  %v1553_v26 = vld [vmem:[%s3126_s8 + $0x8] sm:$0xff]  ;;  %v1262_v28 = vld [vmem:[%s3129_s11] sm:$0xff] }
 0x15f   :  { %v2224_v30 = vmov 0.0|0.0  }
 0x160   :  { %2098 = vmatprep.subr.bf16.mxu1 %v2224_v30 }
 0x161   :  { %v532_v31 = vpop.f32.mrb[4].mxu1 }
 0x162   :  { %v538_v32 = vadd.f32 %v532_v31, %v372_v29  ;;  %v1894_v33 = vpop.f32.mrb[5].mxu1  ;;  %v1263_v29 = vld [vmem:[%s3129_s11 + $0x8] sm:$0xff] }
 0x163   :  { %v2099_v31 = vpack.c.bf16 %v1263_v29, %v1262_v28  ;;  %v1265_v33 = vld [vmem:[%s3129_s11 + $0x18] sm:$0xff]  ;;  %v1280_v29 = vld [vmem:[%s3129_s11 + $0x90] sm:$0x1f] }
 0x164   :  { %v547_v59 = vadd.f32 %v543_v34, %v538_v32  ;;  %v1264_v32 = vld [vmem:[%s3129_s11 + $0x10] sm:$0xff] }
 0x166   :  { %v550_v2 = vmax.f32 %v547_v59, 0.0 }
 0x169   :  { %v461_v35 = vpop.f32.mrb[0].mxu0 }
 0x16a   :  { %v545_v36 = vadd.f32 %v543_v34, %v461_v35  ;;  %v463_v37 = vpop.f32.mrb[1].mxu0  ;;  %v1266_v35 = vld [vmem:[%s3129_s11 + $0x20] sm:$0xff] }
 0x16b   :  { %v546_v40 = vadd.f32 %v543_v34, %v463_v37  ;;  %v2102_v34 = vpack.c.bf16 %v1265_v33, %v1264_v32 }
 0x16c   :  { %v548_v45 = vmax.f32 %v545_v36, 0.0  ;;  %v1267_v36 = vld [vmem:[%s3129_s11 + $0x28] sm:$0xff] }
 0x16d   :  { %v549_v43 = vmax.f32 %v546_v40, 0.0  ;;  %v2105_v37 = vpack.c.bf16 %v1267_v36, %v1266_v35  ;;  %v2108_v40 = vpack.c.bf16 %v1269_v39, %v1268_v38  ;;  %v1452_v39 = vld [vmem:[%s3123_s5] sm:$0xff] }
 0x16f   :  { %702 = vmatprep.mubr.f32.mxu0 %v549_v43  ;;  %926 = vmatprep.mubr.f32.mxu1 %v549_v43  ;;  %v2111_v43 = vpack.c.bf16 %v1271_v42, %v1270_v41  ;;  %v1552_v41 = vld [vmem:[%s3126_s8] sm:$0xff]  ;;  %v1554_v42 = vld [vmem:[%s3126_s8 + $0x10] sm:$0xff] }
 0x170   :  { %703 = vmatmul.mubr.f32.vlgmr.msra.gmra.mrb[2].mxu0 %v548_v45  ;;  %927 = vmatmul.mubr.f32.vlgmr.msra.gmra.mrb[6].mxu1 %v548_v45  ;;  %v1273_v45 = vld [vmem:[%s3129_s11 + $0x58] sm:$0xff] }
 0x171   :  { %2009 = vmatpush1.bf16.msra.mxu0 %v2008_v44  ;;  %773 = vmatprep.mubr.f32.mxu0 %v2219_v3  ;;  %v1272_v44 = vld [vmem:[%s3129_s11 + $0x50] sm:$0xff] }
 0x172   :  { %2011 = vmatprep.subr.bf16.mxu0 %v2010_v46  ;;  %2100 = vmatpush1.bf16.msra.mxu1 %v2099_v31  ;;  %v2114_v46 = vpack.c.bf16 %v1273_v45, %v1272_v44  ;;  %v1377_v31 = vld [vmem:[%s3130_s12 + $0x90] sm:$0x1f] }
 0x173   :  { %2101 = vmatprep.subr.bf16.mxu1 %v2224_v30 }
 0x175   :  { %2013 = vmatpush1.bf16.msra.mxu0 %v2012_v51  ;;  %v1277_v51 = vld [vmem:[%s3129_s11 + $0x78] sm:$0xff] }
 0x176   :  { %2016 = vmatprep.subr.msk.bf16.mxu0 %vm2791_vm7, %v2014_v52  ;;  %2103 = vmatpush1.bf16.msra.mxu1 %v2102_v34  ;;  %v2120_v52 = vpack.c.bf16 %v1277_v51, %v1276_v50 }
 0x177   :  { %2104 = vmatprep.subr.bf16.mxu1 %v2224_v30 }
 0x179   :  { %2019 = vmatpush1.bf16.msk.msra.mxu0 %vm2791_vm7, %v2017_v58  ;;  %v1006_v58 = vld [vmem:[%s3121_s3] sm:$0xff] }
 0x17a   :  { %2085 = vmatprep.subr.bf16.mxu0 %v2084_v60  ;;  %2106 = vmatpush1.bf16.msra.mxu1 %v2105_v37 }
 0x17b   :  { %2107 = vmatprep.subr.bf16.mxu1 %v2224_v30 }
 0x17c   :  { %1831 = vmatmul.mubr.msk.f32.vlgmr.msra.gmra.mrb[2].mxu0 %vm627_vm8, %v550_v2 }
 0x17d   :  { %2087 = vmatpush1.bf16.msra.mxu0 %v2086_v1  ;;  %997 = vmatprep.mubr.f32.mxu0 %v2219_v3  ;;  %v1361_v1 = vld [vmem:[%s3130_s12 + $0x10] sm:$0xff] }
 0x17e   :  { %2089 = vmatprep.subr.bf16.mxu0 %v2088_v4  ;;  %2109 = vmatpush1.bf16.msra.mxu1 %v2108_v40  ;;  %v1454_v40 = vld [vmem:[%s3124_s6] sm:$0xff] }
 0x17f   :  { %2110 = vmatprep.subr.bf16.mxu1 %v2224_v30 }
 0x181   :  { %2091 = vmatpush1.bf16.msra.mxu0 %v2090_v9  ;;  %v1366_v9 = vld [vmem:[%s3130_s12 + $0x38] sm:$0xff] }
 0x182   :  { %2094 = vmatprep.subr.msk.bf16.mxu0 %vm2791_vm7, %v2092_v10  ;;  %2112 = vmatpush1.bf16.msra.mxu1 %v2111_v43  ;;  %v2135_v10 = vpack.c.bf16 %v1366_v9, %v1365_v8  ;;  %v1676_v8 = vld [vmem:[%s3132_s14 + $0x38] sm:$0xff] }
 0x183   :  { %2113 = vmatprep.subr.bf16.mxu1 %v2224_v30 }
 0x185   :  { %2097 = vmatpush1.bf16.msk.msra.mxu0 %vm2791_vm7, %v2095_v13  ;;  %v2138_v13 = vpack.c.bf16 %v1368_v12, %v1367_v11  ;;  %v1678_v11 = vld [vmem:[%s3132_s14 + $0x48] sm:$0x3] }
 0x186   :  { %2115 = vmatpush1.bf16.msra.mxu1 %v2114_v46 }
 0x187   :  { %2116 = vmatprep.subr.bf16.mxu1 %v2224_v30 }
 0x188   :  { %1834 = vmatmul.mubr.msk.f32.vlgmr.msra.gmra.mrb[4].mxu0 %vm627_vm8, %v550_v2  ;;  %v1362_v2 = vld [vmem:[%s3130_s12 + $0x18] sm:$0xff] }
 0x189   :  { %1086 = vmatprep.mubr.f32.mxu0 %v2219_v3  ;;  %v2129_v4 = vpack.c.bf16 %v1362_v2, %v1361_v1  ;;  %v1673_v2 = vld [vmem:[%s3132_s14 + $0x20] sm:$0xff] }
 0x18a   :  { %2118 = vmatpush1.bf16.msra.mxu1 %v2117_v49 }
 0x18b   :  { %2119 = vmatprep.subr.bf16.mxu1 %v2224_v30 }
 0x18e   :  { %2121 = vmatpush1.bf16.msra.mxu1 %v2120_v52 }
 0x18f   :  { %2122 = vmatprep.subr.bf16.mxu1 %v2224_v30 }
 0x243   :  { %v928_v14 = vpop.f32.mrb[6].mxu1 }
 0x244   :  { %v930_v15 = vpop.f32.mrb[7].mxu1 }
 0x24f   :  { %v775_v16 = vpop.f32.mrb[2].mxu0 }
 0x250   :  { %v777_v17 = vpop.f32.mrb[3].mxu0 }
 0x25b   :  { %v999_v18 = vpop.f32.mrb[4].mxu0 }
 0x25c   :  { %v1000_v19 = vadd.f32 %v999_v18, %v928_v14  ;;  %v1001_v20 = vpop.f32.mrb[5].mxu0  ;;  %v1369_v14 = vld [vmem:[%s3130_s12 + $0x50] sm:$0xff]  ;;  %v1372_v18 = vld [vmem:[%s3130_s12 + $0x68] sm:$0xff] }
 0x25d   :  { %v1002_v21 = vadd.f32 %v1001_v20, %v930_v15  ;;  %v1370_v15 = vld [vmem:[%s3130_s12 + $0x58] sm:$0xff]  ;;  %v1373_v20 = vld [vmem:[%s3130_s12 + $0x70] sm:$0xff] }
 0x25e   :  { %v2843_v22 = vmax.f32 %v775_v16, %v1000_v19  ;;  %v2141_v16 = vpack.c.bf16 %v1370_v15, %v1369_v14 }
 0x25f   :  { %v2845_v23 = vmax.f32 %v777_v17, %v1002_v21  ;;  %v1371_v17 = vld [vmem:[%s3130_s12 + $0x60] sm:$0xff]  ;;  %v1374_v21 = vld [vmem:[%s3130_s12 + $0x78] sm:$0xff] }
 0x260   :  { %1169 = vrot.lane.b32.xlu0 %v2843_v22, %s2221_s28  ;;  %1011 = vrot.lane.b32.xlu1 %v2843_v22, %s2218_s26  ;;  %v2144_v19 = vpack.c.bf16 %v1372_v18, %v1371_v17  ;;  %v1663_v17 = vld [vmem:[%s3131_s13] sm:$0xff] }
 0x264   :  { %1255 = vperm.xlu0 %2191, %v1252_v24   ;;  %1013 = vrot.lane.b32.xlu1 %v2845_v23, %s2218_s26  ;;  %v1279_v24 = vld [vmem:[%s3129_s11 + $0x88] sm:$0xff] }
 0x268   :  { %1463 = vperm.xlu0 %2191, %v1455_v25   ;;  %1171 = vrot.lane.b32.xlu1 %v2845_v23, %s2221_s28  ;;  %v1375_v25 = vld [vmem:[%s3130_s12 + $0x80] sm:$0xff] }
 0x26c   :  { %1562 = vperm.xlu0 %2191, %v1553_v26   ;;  %1458 = vperm.xlu1 %2192, %v1454_v40  }
 0x270   :  { %1788 = vperm.xlu0 %2191, %v1785_v27   ;;  %v1376_v27 = vld [vmem:[%s3130_s12 + $0x88] sm:$0xff]  ;;  %1557 = vperm.xlu1 %2192, %v1552_v41  }
 0x271   :  { %v2150_v28 = vpack.c.bf16 %v1376_v27, %v1375_v25 }
 0x274   :  { %1567 = vperm.xlu1 %2192, %v1554_v42  }
 0x2d2   :  { %v1012_v53 = vpop.permute.xlu1 %1011  ;;  %v1170_v59 = vpop.permute.xlu0 %1169 }
 0x2d6   :  { %v1014_v54 = vpop.permute.xlu1 %1013 }
 0x2d7   :  { %v1015_v56 = vsel %vm70_vm2, %v1012_v53, %v1014_v54  ;;  %1022 = vmatprep.subr.mxu0 %v1014_v54 }
 0x2d8   :  { %1023 = vmatpush1.msra.mxu0 %v1015_v56 }
 0x2d9   :  { %1836 = vmatmul.mubr.msk.f32.vlgmr.msra.gmra.mrb[6].mxu0 %vm1018_vm9, %v1835_v55  ;;  %1096 = vmatprep.subr.mxu0 %v2845_v23  ;;  %v1278_v23 = vld [vmem:[%s3129_s11 + $0x80] sm:$0xff] }
 0x2da   :  { %1097 = vmatpush1.msra.mxu0 %v2843_v22  ;;  %v1172_v57 = vpop.permute.xlu1 %1171  ;;  %1160 = vmatprep.mubr.f32.mxu0 %v2219_v3  ;;  %v2147_v22 = vpack.c.bf16 %v1374_v21, %v1373_v20  ;;  %v2123_v26 = vpack.c.bf16 %v1279_v24, %v1278_v23  ;;  %v1664_v23 = vld [vmem:[%s3131_s13 + $0x8] sm:$0xff] }
 0x2db   :  { %1179 = vmatprep.subr.mxu0 %v1172_v57  ;;  %v1173_v60 = vsel %vm383_vm4, %v1170_v59, %v1172_v57  ;;  %v1669_v57 = vld [vmem:[%s3132_s14] sm:$0xff] }
 0x2dc   :  { %2124 = vmatpush1.bf16.msra.mxu1 %v2123_v26 }
 0x2dd   :  { %1325 = vmatprep.subr.mxu1 %v2219_v3 }
 0x2e0   :  { %1840 = vmatpush1.msk.msra.mxu1 %vm1285_vm10, %v1280_v29 }
 0x2e1   :  { %1837 = vmatmul.mubr.msk.f32.vlgmr.msra.gmra.mrb[6].mxu0 %vm1018_vm9, %v1006_v58  ;;  %v1670_v58 = vld [vmem:[%s3132_s14 + $0x8] sm:$0xff] }
 0x2e2   :  { %1180 = vmatpush1.msra.mxu0 %v1173_v60  ;;  %1243 = vmatprep.mubr.f32.mxu0 %v2219_v3  ;;  %v1549_v60 = vld [vmem:[%s3125_s7] sm:$0xff]  ;;  %v2156_v61 = vpack.c.bf16 %v1670_v58, %v1669_v57 }
 0x2e3   :  { %2125 = vmatprep.subr.bf16.mxu0 %v2224_v30  ;;  %v1256_v32 = vpop.permute.xlu0 %1255 }
 0x2e7   :  { %v1464_v49 = vpop.permute.xlu0 %1463 }
 0x2e9   :  { %1839 = vmatmul.mubr.msk.f32.vlgmr.msra.gmra.mrb[6].mxu0 %vm1018_vm9, %v1838_v63  ;;  %v1672_v63 = vld [vmem:[%s3132_s14 + $0x18] sm:$0xff] }
 0x2ea   :  { %2127 = vmatpush1.bf16.msra.mxu0 %v2126_v0  ;;  %v1550_v0 = vld [vmem:[%s3125_s7 + $0x8] sm:$0xff]  ;;  %v2159_v1 = vpack.c.bf16 %v1672_v63, %v1671_v62 }
 0x2eb   :  { %2128 = vmatprep.subr.bf16.mxu0 %v2224_v30  ;;  %v1459_v51 = vpop.permute.xlu1 %1458 }
 0x2ee   :  { %2130 = vmatpush1.bf16.msra.mxu0 %v2129_v4  ;;  %v1674_v4 = vld [vmem:[%s3132_s14 + $0x28] sm:$0xff] }
 0x2ef   :  { %2131 = vmatprep.subr.bf16.mxu0 %v2224_v30  ;;  %v2162_v6 = vpack.c.bf16 %v1674_v4, %v1673_v2 }
 0x2f2   :  { %2133 = vmatpush1.bf16.msra.mxu0 %v2132_v7  ;;  %v1675_v7 = vld [vmem:[%s3132_s14 + $0x30] sm:$0xff] }
 0x2f3   :  { %2134 = vmatprep.subr.bf16.mxu0 %v2224_v30  ;;  %v2165_v9 = vpack.c.bf16 %v1676_v8, %v1675_v7 }
 0x2f6   :  { %2136 = vmatpush1.bf16.msra.mxu0 %v2135_v10  ;;  %v1677_v10 = vld [vmem:[%s3132_s14 + $0x40] sm:$0xff] }
 0x2f7   :  { %2137 = vmatprep.subr.bf16.mxu0 %v2224_v30  ;;  %v2168_v12 = vpack.c.bf16 %v1678_v11, %v1677_v10 }
 0x2fa   :  { %2139 = vmatpush1.bf16.msra.mxu0 %v2138_v13  ;;  %v1558_v13 = vpop.permute.xlu1 %1557 }
 0x2fb   :  { %2140 = vmatprep.subr.bf16.mxu0 %v2224_v30 }
 0x2fe   :  { %2142 = vmatpush1.bf16.msra.mxu0 %v2141_v16  ;;  %v1568_v25 = vpop.permute.xlu1 %1567 }
 0x2ff   :  { %2143 = vmatprep.subr.bf16.mxu0 %v2224_v30 }
 0x302   :  { %2145 = vmatpush1.bf16.msra.mxu0 %v2144_v19 }
 0x303   :  { %2146 = vmatprep.subr.bf16.mxu0 %v2224_v30 }
 0x306   :  { %2148 = vmatpush1.bf16.msra.mxu0 %v2147_v22 }
 0x307   :  { %2149 = vmatprep.subr.bf16.mxu0 %v2224_v30 }
 0x30a   :  { %2151 = vmatpush1.bf16.msra.mxu0 %v2150_v28 }
 0x30b   :  { %1417 = vmatprep.subr.mxu0 %v2219_v3 }
 0x30e   :  { %1842 = vmatpush1.msk.msra.mxu0 %vm1285_vm10, %v1377_v31  ;;  %v1665_v31 = vld [vmem:[%s3131_s13 + $0x10] sm:$0xff]  ;;  %s2225_s13 = smov [#allocation3]  }
 0x30f   :  { %s1804_s28 = sshll.u32 %s2225_s13, 4  ;;  %s1805_s28 = int_to_ptr.vmem [resolvable:$true] %s1804_s28 }
 0x310   :  { %s2194_s1 = scalar_lea.vmem %s1805_s28, 16  ;;  %s2198_s3 = scalar_lea.vmem %s1805_s28, 32 }
 0x311   :  { %p2195_p0 = scmp.ne.s32.totalorder %s1805_s28, %s2194_s1  ;;  %p2199_p1 = scmp.lt.s32.totalorder %s1805_s28, %s1805_s28 }
 0x312   :  { %p2200_p2 = scmp.lt.s32.totalorder %s2198_s3, %s2194_s1 }
 0x314   :  { %p2201_p3 = por %p2200_p2, %p2199_p1 }
 0x316   :  { %p2202_p4 = pnand %p2201_p3, %p2195_p0 }
 0x3bc   :  { %v1245_v33 = vpop.f32.mrb[6].mxu0 }
 0x3bd   :  { %v1258_v34 = vadd.f32 %v1256_v32, %v1245_v33  ;;  %v1247_v35 = vpop.f32.mrb[7].mxu0 }
 0x3be   :  { %v1259_v36 = vadd.f32 %v1256_v32, %v1247_v35 }
 0x3bf   :  { %v1260_v38 = vmax.f32 %v1258_v34, 0.0 }
 0x3c0   :  { %v1261_v37 = vmax.f32 %v1259_v36, 0.0 }
 0x3c2   :  { %1841 = vmatprep.mubr.msk.f32.mxu1 %vm1281_vm11, %v1261_v37  ;;  %1843 = vmatprep.mubr.msk.f32.mxu0 %vm1281_vm11, %v1261_v37 }
 0x3c3   :  { %1354 = vmatmul.mubr.f32.vlgmr.msra.gmra.mrb[8].mxu1 %v1260_v38  ;;  %1446 = vmatmul.mubr.f32.vlgmr.msra.gmra.mrb[8].mxu0 %v1260_v38 }
 0x3c4   :  { %1897 = vmatprep.mubr.msk.f32.mxu1 %vm1018_vm9, %v1452_v39 }
 0x496   :  { %v1355_v43 = vpop.f32.mrb[8].mxu1  ;;  %v1447_v44 = vpop.f32.mrb[8].mxu0 }
 0x497   :  { %v1451_v45 = vmax.f32 %v1355_v43, %v1447_v44  ;;  %v1357_v46 = vpop.f32.mrb[9].mxu1  ;;  %v1449_v47 = vpop.f32.mrb[9].mxu0  ;;  %v1791_v44 = vlaneseq }
 0x499   :  { %1895 = vmatprep.subr.mxu1 %v1451_v45  ;;  %v1792_v47 = vshrl.u32 %v1791_v44, 7 }
 0x49a   :  { %1896 = vmatpush3.msra.mxu1 %v1451_v45 }
 0x49b   :  { %1898 = vmatmul.mubr.msk.f32.vlgmr.msra.gmra.mrb[10].mxu1 %vm1018_vm9, %v1453_v48  ;;  %2152 = vmatprep.subr.bf16.mxu1 %v2224_v30 }
 0x49c   :  { %1904 = vmatprep.mubr.msk.f32.mxu1 %vm2220_vm0, %v2219_v3 }
 0x56e   :  { %v1899_v50 = vpop.f32.mrb[10].mxu1 }
 0x56f   :  { %v1544_v52 = vadd.f32 %v1899_v50, %v1464_v49  ;;  %v1538_v53 = vpop.f32.mrb[11].mxu1  ;;  %v1793_v49 = vsub.s32 0, %v1792_v47 }
 0x570   :  { %v1539_v54 = vadd.f32 %v1538_v53, %v1459_v51 }
 0x571   :  { %v1548_v55 = vmax.f32 %v1544_v52, 0.0 }
 0x572   :  { %v1547_v56 = vmax.f32 %v1539_v54, 0.0 }
 0x574   :  { %v2153_v59 = vpack.c.bf16 %v1548_v55, %v1547_v56 }
 0x576   :  { %2154 = vmatpush3.bf16.msra.mxu1 %v2153_v59 }
 0x577   :  { %2155 = vmatprep.subr.bf16.mxu1 %v2224_v30 }
 0x579   :  { %1905 = vmatmul.mubr.msk.f32.vlgmr.msra.gmra.mrb[12].mxu1 %vm1570_vm12, %v1549_v60 }
 0x57a   :  { %1907 = vmatprep.mubr.msk.f32.mxu1 %vm2220_vm0, %v2219_v3  ;;  %2157 = vmatpush3.bf16.msra.mxu1 %v2156_v61 }
 0x57b   :  { %2158 = vmatprep.subr.bf16.mxu1 %v2224_v30 }
 0x57d   :  { %1908 = vmatmul.mubr.msk.f32.gmra.mrb[14].mxu1 %vm1570_vm12, %v1550_v0 }
 0x57e   :  { %1910 = vmatprep.mubr.msk.f32.mxu1 %vm2220_vm0, %v2219_v3  ;;  %2160 = vmatpush3.bf16.msra.mxu1 %v2159_v1 }
 0x57f   :  { %2161 = vmatprep.subr.bf16.mxu1 %v2224_v30 }
 0x581   :  { %1911 = vmatmul.mubr.msk.f32.gmra.mrb[16].mxu1 %vm1570_vm12, %v1551_v5 }
 0x582   :  { %2163 = vmatpush3.bf16.msra.mxu1 %v2162_v6  ;;  %1933 = vmatprep.mubr.msk.f32.mxu1 %vm2220_vm0, %v2219_v3 }
 0x583   :  { %2164 = vmatprep.subr.bf16.mxu1 %v2224_v30 }
 0x586   :  { %2166 = vmatpush3.bf16.msra.mxu1 %v2165_v9 }
 0x587   :  { %2167 = vmatprep.subr.bf16.mxu1 %v2224_v30  ;;  %v1563_v30 = vpop.permute.xlu0 %1562 }
 0x58a   :  { %2170 = vmatpush3.bf16.msk.msra.mxu1 %vm2169_vm14, %v2168_v12 }
 0x58b   :  { %v1789_v51 = vpop.permute.xlu0 %1788 }
 0x58c   :  { %v1794_v53 = vrot.slane %v1789_v51, %v1793_v49 }
 0x64c   :  { %v1646_v14 = vpop.f32.mrb[12].mxu1 }
 0x64d   :  { %v1647_v15 = vadd.f32 %v1646_v14, %v1558_v13  ;;  %v1906_v16 = vpop.f32.mrb[13].mxu1 }
 0x64f   :  { %v1660_v18 = vmax.f32 %v1647_v15, 0.0 }
 0x650   :  { %v1651_v19 = vpop.f32.mrb[14].mxu1 }
 0x651   :  { %v1666_v20 = vmul.f32 %v1663_v17, %v1660_v18  ;;  %v1652_v21 = vadd.f32 %v1651_v19, %v1563_v30  ;;  %v1909_v22 = vpop.f32.mrb[15].mxu1 }
 0x653   :  { %v1661_v24 = vmax.f32 %v1652_v21, 0.0  ;;  %1934 = vmatmul.mubr.msk.f32.vlgmr.msra.gmra.mrb[18].mxu1 %vm1679_vm15, %v1666_v20 }
 0x654   :  { %v1656_v26 = vpop.f32.mrb[16].mxu1  ;;  %1936 = vmatprep.mubr.msk.f32.mxu1 %vm2220_vm0, %v2219_v3 }
 0x655   :  { %v1667_v27 = vmul.f32 %v1664_v23, %v1661_v24  ;;  %v1657_v28 = vadd.f32 %v1656_v26, %v1568_v25  ;;  %v1912_v29 = vpop.f32.mrb[17].mxu1 }
 0x657   :  { %v1662_v32 = vmax.f32 %v1657_v28, 0.0  ;;  %1937 = vmatmul.mubr.msk.f32.gmra.mrb[20].mxu1 %vm1679_vm15, %v1667_v27 }
 0x658   :  { %1939 = vmatprep.mubr.msk.f32.mxu1 %vm2220_vm0, %v2219_v3  ;;  %vm1796_vm0 = vcmask 8192  }
 0x659   :  { %v1668_v33 = vmul.f32 %v1665_v31, %v1662_v32 }
 0x65b   :  { %1940 = vmatmul.mubr.msk.f32.gmra.mrb[22].mxu1 %vm1679_vm15, %v1668_v33 }
 0x726   :  { %v1759_v34 = vpop.f32.mrb[18].mxu1 }
 0x727   :  { %v1935_v35 = vpop.f32.mrb[19].mxu1  ;;  %v1774_v37 = vsel %vm1773_vm1, %v1759_v34, 0.0 }
 0x72a   :  { %v1764_v36 = vpop.f32.mrb[20].mxu1 }
 0x72b   :  { %v1775_v38 = vsel %vm1773_vm1, %v1764_v36, 0.0  ;;  %v1938_v39 = vpop.f32.mrb[21].mxu1 }
 0x72c   :  { %v1776_v40 = vadd.f32 %v1775_v38, %v1774_v37 }
 0x72e   :  { %v1769_v41 = vpop.f32.mrb[22].mxu1 }
 0x72f   :  { %v1777_v42 = vsel %vm1773_vm1, %v1769_v41, 0.0  ;;  %v1941_v43 = vpop.f32.mrb[23].mxu1 }
 0x730   :  { %v1778_v45 = vadd.f32 %v1777_v42, %v1776_v40 }
 0x732   :  { %v1779_v46 = vrot.slane %v1778_v45, 4 }
 0x734   :  { %v1780_v48 = vadd.f32 %v1779_v46, %v1778_v45 }
 0x736   :  { %v1781_v3 = vrot.slane %v1780_v48, 2 }
 0x738   :  { %v1782_v50 = vadd.f32 %v1781_v3, %v1780_v48 }
 0x73a   :  { %v1783_v52 = vrot.slane %v1782_v50, 1 }
 0x73c   :  { %v1784_v54 = vadd.f32 %v1783_v52, %v1782_v50 }
 0x73e   :  { %v1795_v55 = vadd.f32 %v1794_v53, %v1784_v54 }
 0x740   :  { %1797 = vst.msk [vmem:[#allocation3] sm:$0x1] %vm1796_vm0, %v1795_v55 }
 0x741   :  { %2205 = shalt.err (!%p2202_p4)
}
 0x742   :  { %s2206_s30 = scalar_lea.hbm %s3134_s16, 16 }
 0x743   :  { %p2207_p5 = scmp.ne.s32.totalorder %s3134_s16, %s2206_s30  ;;  %p2210_p6 = scmp.lt.u32.totalorder %s2206_s30, %s3134_s16 }
 0x745   :  { %p2212_p7 = pnand %p2210_p6, %p2207_p5 }
 0x747   :  { %2215 = shalt.err (!%p2212_p7)
}
 0x748   :  { %1807 = dma.vmem_to_hbm [thread:$0]  %s1805_s28, 16, %s3134_s16, [#allocation4]  }
 0x749   :  { %2216 = dma.done.wait [#allocation4], 16  }
 0x74a   :  { %2217 = vsyncadd [#allocation4], 4294967280 }
 0x74b   :  { %1811 = vsyncpa [#allocation4], 1 }

</bundles_post_ra>
